<compile_context>
chip_gen: v7x
topology: tpu7x:2x2x1
jax: 0.10.0
libtpu: 0.0.40
codegen_flags: <defaults>
</compile_context>

<pallas_src>
import jax
import jax.numpy as jnp
from jax.experimental import pallas as pl
from jax.experimental.pallas import tpu as pltpu

EPS = 1e-5


def _basic_block_kernel(x_ref, w1_ref, w2_ref, g1_ref, b1_ref, g2_ref, b2_ref,
                        p_ref, o_ref, pad_ref):
    # x_ref:   (N, H, L)    f32 input, L = W*C lane-dense
    # w1_ref:  (3, L, L)    bf16 banded conv1 weights (one matrix per ky tap)
    # w2_ref:  (3, L, L)    f32  banded conv2 weights
    # g*/b*:   (1, L)       BN affine params tiled along the lane axis
    # p_ref:   (L, L)       channel-sum projector, pre-scaled by 1/(N*H*W)
    # o_ref:   (N*H, L)     lane-dense output slab
    # pad_ref: (N, H+2, L)  row-padded activation scratch (reused by both convs)
    N, H, L = x_ref.shape
    NH = N * H

    # Zero only the 1-row halo (columns need no padding: the banded weights
    # already encode the SAME column padding).  Halo stays zero for both convs.
    zrow = jnp.zeros((N, 1, L), jnp.float32)
    pad_ref[:, 0:1, :] = zrow
    pad_ref[:, H + 1:H + 2, :] = zrow
    pad_ref[:, 1:H + 1, :] = x_ref[...]

    def conv3x3(w_ref, cast_bf16):
        acc = jnp.zeros((NH, L), jnp.float32)
        for dy in range(3):                      # 3 lane-dense MXU matmuls
            rows = pad_ref[:, dy:dy + H, :].reshape(NH, L)
            if cast_bf16:
                rows = rows.astype(jnp.bfloat16)  # exact for quantized input
            acc = acc + jnp.dot(rows, w_ref[dy],
                                preferred_element_type=jnp.float32)
        return acc

    def batchnorm(acc, g_ref, b_ref):
        # Single-pass batch stats: per-lane sum / sum-of-squares, then one tiny
        # matmul reduces over the W lane groups per channel *and* broadcasts
        # the result back to every lane position of that channel.
        s1 = jnp.sum(acc, axis=0, keepdims=True)
        s2 = jnp.sum(acc * acc, axis=0, keepdims=True)
        stats = jnp.dot(jnp.concatenate([s1, s2], axis=0), p_ref[...],
                        preferred_element_type=jnp.float32)
        mean = stats[0:1, :]
        var = stats[1:2, :] - mean * mean        # E[x^2] - mean^2 (f32)
        return (acc - mean) * jax.lax.rsqrt(var + EPS) * g_ref[...] + b_ref[...]

    # ---- conv1 -> bn1 -> relu ----
    out1 = jnp.maximum(batchnorm(conv3x3(w1_ref, True), g1_ref, b1_ref), 0.0)

    # Reuse the scratch: overwrite only the interior rows (halo already zero).
    pad_ref[:, 1:H + 1, :] = out1.reshape(N, H, L)

    # ---- conv2 -> bn2 ----
    out2 = batchnorm(conv3x3(w2_ref, False), g2_ref, b2_ref)

    # ---- identity shortcut + relu, lane-dense (N*H, 128) store ----
    # TODO(synk): option-A strided/zero-pad and option-B conv shortcuts
    # (stride != 1 or in_planes != planes) are not exercised here.
    res = jnp.maximum(out2 + x_ref[...].reshape(NH, L), 0.0)
    o_ref[...] = res.astype(o_ref.dtype)


def basic_block(x_nchw, w1, w2, g1, b1, g2, b2):
    """BasicBlock forward.  x_nchw: (N, C, H, W); w*: torch (Cout, Cin, 3, 3)."""
    x = jnp.transpose(x_nchw, (0, 2, 3, 1)).astype(jnp.float32)   # NCHW -> NHWC
    N, H, W, Cin = x.shape
    Cout = w1.shape[0]
    assert Cin == Cout, "identity shortcut requires in_planes == planes (stride=1)"
    C = Cin
    L = W * C

    x2 = x.reshape(N, H, L)                      # lane-dense 3-D view (free)

    def banded(w):
        # torch (Cout, Cin, 3, 3) -> (3, W*Cin, W*Cout) banded matrices:
        # Wb[dy][(x+dx-1)*Cin + ci, x*Cout + co] = w[co, ci, dy, dx],
        # with out-of-range columns (SAME padding) simply absent (zero).
        wk = jnp.transpose(w, (2, 3, 1, 0)).astype(jnp.float32)   # (ky,kx,Ci,Co)
        return jnp.stack([
            sum(jnp.kron(jnp.eye(W, k=1 - dx, dtype=jnp.float32), wk[dy, dx])
                for dx in range(3))
            for dy in range(3)])

    w1b = banded(w1).astype(jnp.bfloat16)   # conv1 operands bf16 (lossless here)
    w2b = banded(w2)                        # conv2 activations aren't: keep f32

    def tile_lane(v):                       # per-channel vec -> (1, W*C) lanes
        return jnp.tile(v.astype(jnp.float32), W).reshape(1, L)

    # Channel-sum projector (tiled identity), with BN's 1/M folded in.
    p = jnp.tile(jnp.eye(C, dtype=jnp.float32), (W, W)) / float(N * H * W)

    out2d = pl.pallas_call(
        _basic_block_kernel,
        out_shape=jax.ShapeDtypeStruct((N * H, L), x.dtype),
        in_specs=[pl.BlockSpec(memory_space=pltpu.MemorySpace.VMEM)] * 8,
        out_specs=pl.BlockSpec(memory_space=pltpu.MemorySpace.VMEM),
        scratch_shapes=[pltpu.VMEM((N, H + 2, L), jnp.float32)],
    )(x2, w1b, w2b, tile_lane(g1), tile_lane(b1), tile_lane(g2), tile_lane(b2), p)

    out = out2d.reshape(N, H, W, Cout)
    return jnp.transpose(out, (0, 3, 1, 2))      # NHWC -> NCHW


def _ref_basic_block(x_nchw, w1, w2, g1, b1, g2, b2):
    """Pure-JAX reference of the PyTorch forward (training-mode BN)."""
    x = jnp.transpose(x_nchw, (0, 2, 3, 1))

    def conv(h, w):
        w_hwio = jnp.transpose(w, (2, 3, 1, 0))
        return jax.lax.conv_general_dilated(
            h, w_hwio, (1, 1), 'SAME',
            dimension_numbers=('NHWC', 'HWIO', 'NHWC'))

    def bn(h, g, b):
        m = jnp.mean(h, axis=(0, 1, 2), keepdims=True)
        v = jnp.mean((h - m) ** 2, axis=(0, 1, 2), keepdims=True)
        return (h - m) * jax.lax.rsqrt(v + EPS) * g + b

    out = jax.nn.relu(bn(conv(x, w1), g1, b1))
    out = bn(conv(out, w2), g2, b2)
    out = jax.nn.relu(out + x)
    return jnp.transpose(out, (0, 3, 1, 2))


if __name__ == "__main__":
    N, C, H, W = 2, 8, 16, 16      # in_planes == planes == 8, stride == 1
    key = jax.random.PRNGKey(0)
    k1, k2, k3, k4, k5, k6, k7 = jax.random.split(key, 7)

    def q(a):  # round to bf16-representable f32 so MXU bf16 products are exact
        return a.astype(jnp.bfloat16).astype(jnp.float32)

    x = q(jax.random.normal(k1, (N, C, H, W), jnp.float32))
    conv1_w = q(0.2 * jax.random.normal(k2, (C, C, 3, 3), jnp.float32))
    conv2_w = q(0.2 * jax.random.normal(k3, (C, C, 3, 3), jnp.float32))
    bn1_g = q(1.0 + 0.1 * jax.random.normal(k4, (C,), jnp.float32))
    bn1_b = q(0.1 * jax.random.normal(k5, (C,), jnp.float32))
    bn2_g = q(1.0 + 0.1 * jax.random.normal(k6, (C,), jnp.float32))
    bn2_b = q(0.1 * jax.random.normal(k7, (C,), jnp.float32))

    out = basic_block(x, conv1_w, conv2_w, bn1_g, bn1_b, bn2_g, bn2_b)
    out = jax.block_until_ready(out)

    ref = _ref_basic_block(x, conv1_w, conv2_w, bn1_g, bn1_b, bn2_g, bn2_b)
    assert out.shape == (N, C, H, W), out.shape
    max_err = float(jnp.max(jnp.abs(out - ref)))
    assert jnp.allclose(out, ref, atol=2e-3, rtol=2e-3), max_err
    print("KERNEL_OK")
</pallas_src>

<mosaic_0001>
module attributes {stable_mosaic.version = 11 : i64} {
  func.func @_basic_block_kernel(%arg0: memref<2x16x128xf32, #tpu.memory_space<vmem>>, %arg1: memref<3x128x128xbf16, #tpu.memory_space<vmem>>, %arg2: memref<3x128x128xf32, #tpu.memory_space<vmem>>, %arg3: memref<1x128xf32, #tpu.memory_space<vmem>>, %arg4: memref<1x128xf32, #tpu.memory_space<vmem>>, %arg5: memref<1x128xf32, #tpu.memory_space<vmem>>, %arg6: memref<1x128xf32, #tpu.memory_space<vmem>>, %arg7: memref<128x128xf32, #tpu.memory_space<vmem>>, %arg8: memref<32x128xf32, #tpu.memory_space<vmem>>, %arg9: memref<2x18x128xf32, #tpu.memory_space<vmem>>) attributes {dimension_semantics = [], scalar_prefetch = 0 : i64, scratch_operands = 1 : i64, tpu.core_type = #tpu.core_type<tc>} {
    %cst = arith.constant 0.000000e+00 : f32
    %0 = vector.broadcast %cst : f32 to vector<2x1x128xf32>
    %c0 = arith.constant 0 : index
    %c0_0 = arith.constant 0 : index
    %c0_1 = arith.constant 0 : index
    %1 = vector.load %arg9[%c0, %c0_0, %c0_1] : memref<2x18x128xf32, #tpu.memory_space<vmem>>, vector<2x1x128xf32>
    tpu.vector_store %arg9[%c0, %c0_0, %c0_1], %0 {strides = array<i32>} : memref<2x18x128xf32, #tpu.memory_space<vmem>>, vector<2x1x128xf32>,
    %c0_2 = arith.constant 0 : index
    %c17 = arith.constant 17 : index
    %c0_3 = arith.constant 0 : index
    %2 = vector.load %arg9[%c0_2, %c17, %c0_3] : memref<2x18x128xf32, #tpu.memory_space<vmem>>, vector<2x1x128xf32>
    tpu.vector_store %arg9[%c0_2, %c17, %c0_3], %0 {strides = array<i32>} : memref<2x18x128xf32, #tpu.memory_space<vmem>>, vector<2x1x128xf32>,
    %c0_4 = arith.constant 0 : index
    %c0_5 = arith.constant 0 : index
    %c0_6 = arith.constant 0 : index
    %3 = vector.load %arg0[%c0_4, %c0_5, %c0_6] : memref<2x16x128xf32, #tpu.memory_space<vmem>>, vector<2x16x128xf32>
    %c0_7 = arith.constant 0 : index
    %c1 = arith.constant 1 : index
    %c0_8 = arith.constant 0 : index
    %4 = vector.load %arg9[%c0_7, %c1, %c0_8] : memref<2x18x128xf32, #tpu.memory_space<vmem>>, vector<2x16x128xf32>
    tpu.vector_store %arg9[%c0_7, %c1, %c0_8], %3 {strides = array<i32>} : memref<2x18x128xf32, #tpu.memory_space<vmem>>, vector<2x16x128xf32>,
    %cst_9 = arith.constant 0.000000e+00 : f32
    %5 = vector.broadcast %cst_9 : f32 to vector<32x128xf32>
    %c0_10 = arith.constant 0 : index
    %c0_11 = arith.constant 0 : index
    %c0_12 = arith.constant 0 : index
    %6 = vector.load %arg9[%c0_10, %c0_11, %c0_12] : memref<2x18x128xf32, #tpu.memory_space<vmem>>, vector<2x16x128xf32>
    %7 = vector.shape_cast %6 : vector<2x16x128xf32> to vector<32x128xf32>
    %8 = arith.truncf %7 : vector<32x128xf32> to vector<32x128xbf16>
    %c0_13 = arith.constant 0 : index
    %c0_14 = arith.constant 0 : index
    %c0_15 = arith.constant 0 : index
    %9 = vector.load %arg1[%c0_13, %c0_14, %c0_15] : memref<3x128x128xbf16, #tpu.memory_space<vmem>>, vector<1x128x128xbf16>
    %10 = vector.shape_cast %9 : vector<1x128x128xbf16> to vector<128x128xbf16>
    %cst_16 = arith.constant dense<0.000000e+00> : vector<32x128xf32>
    %11 = tpu.matmul %8, %10, %cst_16 {dimension_numbers = #tpu.dot_dimension_numbers<[1], [0], [0], [1], [0, 0, 1, 1], [], []>} : vector<32x128xbf16>, vector<128x128xbf16>, vector<32x128xf32> -> vector<32x128xf32>
    %12 = arith.addf %5, %11 : vector<32x128xf32>
    %c0_17 = arith.constant 0 : index
    %c1_18 = arith.constant 1 : index
    %c0_19 = arith.constant 0 : index
    %13 = vector.load %arg9[%c0_17, %c1_18, %c0_19] : memref<2x18x128xf32, #tpu.memory_space<vmem>>, vector<2x16x128xf32>
    %14 = vector.shape_cast %13 : vector<2x16x128xf32> to vector<32x128xf32>
    %15 = arith.truncf %14 : vector<32x128xf32> to vector<32x128xbf16>
    %c1_20 = arith.constant 1 : index
    %c0_21 = arith.constant 0 : index
    %c0_22 = arith.constant 0 : index
    %16 = vector.load %arg1[%c1_20, %c0_21, %c0_22] : memref<3x128x128xbf16, #tpu.memory_space<vmem>>, vector<1x128x128xbf16>
    %17 = vector.shape_cast %16 : vector<1x128x128xbf16> to vector<128x128xbf16>
    %cst_23 = arith.constant dense<0.000000e+00> : vector<32x128xf32>
    %18 = tpu.matmul %15, %17, %cst_23 {dimension_numbers = #tpu.dot_dimension_numbers<[1], [0], [0], [1], [0, 0, 1, 1], [], []>} : vector<32x128xbf16>, vector<128x128xbf16>, vector<32x128xf32> -> vector<32x128xf32>
    %19 = arith.addf %12, %18 : vector<32x128xf32>
    %c0_24 = arith.constant 0 : index
    %c2 = arith.constant 2 : index
    %c0_25 = arith.constant 0 : index
    %20 = vector.load %arg9[%c0_24, %c2, %c0_25] : memref<2x18x128xf32, #tpu.memory_space<vmem>>, vector<2x16x128xf32>
    %21 = vector.shape_cast %20 : vector<2x16x128xf32> to vector<32x128xf32>
    %22 = arith.truncf %21 : vector<32x128xf32> to vector<32x128xbf16>
    %c2_26 = arith.constant 2 : index
    %c0_27 = arith.constant 0 : index
    %c0_28 = arith.constant 0 : index
    %23 = vector.load %arg1[%c2_26, %c0_27, %c0_28] : memref<3x128x128xbf16, #tpu.memory_space<vmem>>, vector<1x128x128xbf16>
    %24 = vector.shape_cast %23 : vector<1x128x128xbf16> to vector<128x128xbf16>
    %cst_29 = arith.constant dense<0.000000e+00> : vector<32x128xf32>
    %25 = tpu.matmul %22, %24, %cst_29 {dimension_numbers = #tpu.dot_dimension_numbers<[1], [0], [0], [1], [0, 0, 1, 1], [], []>} : vector<32x128xbf16>, vector<128x128xbf16>, vector<32x128xf32> -> vector<32x128xf32>
    %26 = arith.addf %19, %25 : vector<32x128xf32>
    %cst_30 = arith.constant dense<0.000000e+00> : vector<128xf32>
    %27 = vector.multi_reduction <add>, %26, %cst_30 [0] : vector<32x128xf32> to vector<128xf32>
    %28 = vector.shape_cast %27 : vector<128xf32> to vector<1x128xf32>
    %29 = arith.mulf %26, %26 : vector<32x128xf32>
    %cst_31 = arith.constant dense<0.000000e+00> : vector<128xf32>
    %30 = vector.multi_reduction <add>, %29, %cst_31 [0] : vector<32x128xf32> to vector<128xf32>
    %31 = vector.shape_cast %30 : vector<128xf32> to vector<1x128xf32>
    %32 = tpu.concatenate %28, %31 in 0 : vector<1x128xf32>, vector<1x128xf32> -> vector<2x128xf32>
    %c0_32 = arith.constant 0 : index
    %c0_33 = arith.constant 0 : index
    %33 = vector.load %arg7[%c0_32, %c0_33] : memref<128x128xf32, #tpu.memory_space<vmem>>, vector<128x128xf32>
    %cst_34 = arith.constant dense<0.000000e+00> : vector<2x128xf32>
    %34 = tpu.matmul %32, %33, %cst_34 {dimension_numbers = #tpu.dot_dimension_numbers<[1], [0], [0], [1], [0, 0, 1, 1], [], []>} : vector<2x128xf32>, vector<128x128xf32>, vector<2x128xf32> -> vector<2x128xf32>
    %35 = vector.extract_strided_slice %34 {offsets = [0, 0], sizes = [1, 128], strides = [1, 1]} : vector<2x128xf32> to vector<1x128xf32>
    %36 = vector.extract_strided_slice %34 {offsets = [1, 0], sizes = [1, 128], strides = [1, 1]} : vector<2x128xf32> to vector<1x128xf32>
    %37 = arith.mulf %35, %35 : vector<1x128xf32>
    %38 = arith.subf %36, %37 : vector<1x128xf32>
    %39 = vector.broadcast %35 : vector<1x128xf32> to vector<32x128xf32>
    %40 = arith.subf %26, %39 : vector<32x128xf32>
    %cst_35 = arith.constant 9.99999974E-6 : f32
    %41 = vector.broadcast %cst_35 : f32 to vector<1x128xf32>
    %42 = arith.addf %38, %41 : vector<1x128xf32>
    %43 = math.rsqrt %42 : vector<1x128xf32>
    %44 = vector.broadcast %43 : vector<1x128xf32> to vector<32x128xf32>
    %45 = arith.mulf %40, %44 : vector<32x128xf32>
    %c0_36 = arith.constant 0 : index
    %c0_37 = arith.constant 0 : index
    %46 = vector.load %arg3[%c0_36, %c0_37] : memref<1x128xf32, #tpu.memory_space<vmem>>, vector<1x128xf32>
    %47 = vector.broadcast %46 : vector<1x128xf32> to vector<32x128xf32>
    %48 = arith.mulf %45, %47 : vector<32x128xf32>
    %c0_38 = arith.constant 0 : index
    %c0_39 = arith.constant 0 : index
    %49 = vector.load %arg4[%c0_38, %c0_39] : memref<1x128xf32, #tpu.memory_space<vmem>>, vector<1x128xf32>
    %50 = vector.broadcast %49 : vector<1x128xf32> to vector<32x128xf32>
    %51 = arith.addf %48, %50 : vector<32x128xf32>
    %cst_40 = arith.constant 0.000000e+00 : f32
    %52 = vector.broadcast %cst_40 : f32 to vector<32x128xf32>
    %53 = arith.maximumf %51, %52 : vector<32x128xf32>
    %54 = vector.shape_cast %53 : vector<32x128xf32> to vector<2x16x128xf32>
    %c0_41 = arith.constant 0 : index
    %c1_42 = arith.constant 1 : index
    %c0_43 = arith.constant 0 : index
    %55 = vector.load %arg9[%c0_41, %c1_42, %c0_43] : memref<2x18x128xf32, #tpu.memory_space<vmem>>, vector<2x16x128xf32>
    tpu.vector_store %arg9[%c0_41, %c1_42, %c0_43], %54 {strides = array<i32>} : memref<2x18x128xf32, #tpu.memory_space<vmem>>, vector<2x16x128xf32>,
    %cst_44 = arith.constant 0.000000e+00 : f32
    %56 = vector.broadcast %cst_44 : f32 to vector<32x128xf32>
    %c0_45 = arith.constant 0 : index
    %c0_46 = arith.constant 0 : index
    %c0_47 = arith.constant 0 : index
    %57 = vector.load %arg9[%c0_45, %c0_46, %c0_47] : memref<2x18x128xf32, #tpu.memory_space<vmem>>, vector<2x16x128xf32>
    %58 = vector.shape_cast %57 : vector<2x16x128xf32> to vector<32x128xf32>
    %c0_48 = arith.constant 0 : index
    %c0_49 = arith.constant 0 : index
    %c0_50 = arith.constant 0 : index
    %59 = vector.load %arg2[%c0_48, %c0_49, %c0_50] : memref<3x128x128xf32, #tpu.memory_space<vmem>>, vector<1x128x128xf32>
    %60 = vector.shape_cast %59 : vector<1x128x128xf32> to vector<128x128xf32>
    %cst_51 = arith.constant dense<0.000000e+00> : vector<32x128xf32>
    %61 = tpu.matmul %58, %60, %cst_51 {dimension_numbers = #tpu.dot_dimension_numbers<[1], [0], [0], [1], [0, 0, 1, 1], [], []>} : vector<32x128xf32>, vector<128x128xf32>, vector<32x128xf32> -> vector<32x128xf32>
    %62 = arith.addf %56, %61 : vector<32x128xf32>
    %c0_52 = arith.constant 0 : index
    %c1_53 = arith.constant 1 : index
    %c0_54 = arith.constant 0 : index
    %63 = vector.load %arg9[%c0_52, %c1_53, %c0_54] : memref<2x18x128xf32, #tpu.memory_space<vmem>>, vector<2x16x128xf32>
    %64 = vector.shape_cast %63 : vector<2x16x128xf32> to vector<32x128xf32>
    %c1_55 = arith.constant 1 : index
    %c0_56 = arith.constant 0 : index
    %c0_57 = arith.constant 0 : index
    %65 = vector.load %arg2[%c1_55, %c0_56, %c0_57] : memref<3x128x128xf32, #tpu.memory_space<vmem>>, vector<1x128x128xf32>
    %66 = vector.shape_cast %65 : vector<1x128x128xf32> to vector<128x128xf32>
    %cst_58 = arith.constant dense<0.000000e+00> : vector<32x128xf32>
    %67 = tpu.matmul %64, %66, %cst_58 {dimension_numbers = #tpu.dot_dimension_numbers<[1], [0], [0], [1], [0, 0, 1, 1], [], []>} : vector<32x128xf32>, vector<128x128xf32>, vector<32x128xf32> -> vector<32x128xf32>
    %68 = arith.addf %62, %67 : vector<32x128xf32>
    %c0_59 = arith.constant 0 : index
    %c2_60 = arith.constant 2 : index
    %c0_61 = arith.constant 0 : index
    %69 = vector.load %arg9[%c0_59, %c2_60, %c0_61] : memref<2x18x128xf32, #tpu.memory_space<vmem>>, vector<2x16x128xf32>
    %70 = vector.shape_cast %69 : vector<2x16x128xf32> to vector<32x128xf32>
    %c2_62 = arith.constant 2 : index
    %c0_63 = arith.constant 0 : index
    %c0_64 = arith.constant 0 : index
    %71 = vector.load %arg2[%c2_62, %c0_63, %c0_64] : memref<3x128x128xf32, #tpu.memory_space<vmem>>, vector<1x128x128xf32>
    %72 = vector.shape_cast %71 : vector<1x128x128xf32> to vector<128x128xf32>
    %cst_65 = arith.constant dense<0.000000e+00> : vector<32x128xf32>
    %73 = tpu.matmul %70, %72, %cst_65 {dimension_numbers = #tpu.dot_dimension_numbers<[1], [0], [0], [1], [0, 0, 1, 1], [], []>} : vector<32x128xf32>, vector<128x128xf32>, vector<32x128xf32> -> vector<32x128xf32>
    %74 = arith.addf %68, %73 : vector<32x128xf32>
    %cst_66 = arith.constant dense<0.000000e+00> : vector<128xf32>
    %75 = vector.multi_reduction <add>, %74, %cst_66 [0] : vector<32x128xf32> to vector<128xf32>
    %76 = vector.shape_cast %75 : vector<128xf32> to vector<1x128xf32>
    %77 = arith.mulf %74, %74 : vector<32x128xf32>
    %cst_67 = arith.constant dense<0.000000e+00> : vector<128xf32>
    %78 = vector.multi_reduction <add>, %77, %cst_67 [0] : vector<32x128xf32> to vector<128xf32>
    %79 = vector.shape_cast %78 : vector<128xf32> to vector<1x128xf32>
    %80 = tpu.concatenate %76, %79 in 0 : vector<1x128xf32>, vector<1x128xf32> -> vector<2x128xf32>
    %c0_68 = arith.constant 0 : index
    %c0_69 = arith.constant 0 : index
    %81 = vector.load %arg7[%c0_68, %c0_69] : memref<128x128xf32, #tpu.memory_space<vmem>>, vector<128x128xf32>
    %cst_70 = arith.constant dense<0.000000e+00> : vector<2x128xf32>
    %82 = tpu.matmul %80, %81, %cst_70 {dimension_numbers = #tpu.dot_dimension_numbers<[1], [0], [0], [1], [0, 0, 1, 1], [], []>} : vector<2x128xf32>, vector<128x128xf32>, vector<2x128xf32> -> vector<2x128xf32>
    %83 = vector.extract_strided_slice %82 {offsets = [0, 0], sizes = [1, 128], strides = [1, 1]} : vector<2x128xf32> to vector<1x128xf32>
    %84 = vector.extract_strided_slice %82 {offsets = [1, 0], sizes = [1, 128], strides = [1, 1]} : vector<2x128xf32> to vector<1x128xf32>
    %85 = arith.mulf %83, %83 : vector<1x128xf32>
    %86 = arith.subf %84, %85 : vector<1x128xf32>
    %87 = vector.broadcast %83 : vector<1x128xf32> to vector<32x128xf32>
    %88 = arith.subf %74, %87 : vector<32x128xf32>
    %cst_71 = arith.constant 9.99999974E-6 : f32
    %89 = vector.broadcast %cst_71 : f32 to vector<1x128xf32>
    %90 = arith.addf %86, %89 : vector<1x128xf32>
    %91 = math.rsqrt %90 : vector<1x128xf32>
    %92 = vector.broadcast %91 : vector<1x128xf32> to vector<32x128xf32>
    %93 = arith.mulf %88, %92 : vector<32x128xf32>
    %c0_72 = arith.constant 0 : index
    %c0_73 = arith.constant 0 : index
    %94 = vector.load %arg5[%c0_72, %c0_73] : memref<1x128xf32, #tpu.memory_space<vmem>>, vector<1x128xf32>
    %95 = vector.broadcast %94 : vector<1x128xf32> to vector<32x128xf32>
    %96 = arith.mulf %93, %95 : vector<32x128xf32>
    %c0_74 = arith.constant 0 : index
    %c0_75 = arith.constant 0 : index
    %97 = vector.load %arg6[%c0_74, %c0_75] : memref<1x128xf32, #tpu.memory_space<vmem>>, vector<1x128xf32>
    %98 = vector.broadcast %97 : vector<1x128xf32> to vector<32x128xf32>
    %99 = arith.addf %96, %98 : vector<32x128xf32>
    %c0_76 = arith.constant 0 : index
    %c0_77 = arith.constant 0 : index
    %c0_78 = arith.constant 0 : index
    %100 = vector.load %arg0[%c0_76, %c0_77, %c0_78] : memref<2x16x128xf32, #tpu.memory_space<vmem>>, vector<2x16x128xf32>
    %101 = vector.shape_cast %100 : vector<2x16x128xf32> to vector<32x128xf32>
    %102 = arith.addf %99, %101 : vector<32x128xf32>
    %cst_79 = arith.constant 0.000000e+00 : f32
    %103 = vector.broadcast %cst_79 : f32 to vector<32x128xf32>
    %104 = arith.maximumf %102, %103 : vector<32x128xf32>
    %c0_80 = arith.constant 0 : index
    %c0_81 = arith.constant 0 : index
    %105 = vector.load %arg8[%c0_80, %c0_81] : memref<32x128xf32, #tpu.memory_space<vmem>>, vector<32x128xf32>
    tpu.vector_store %arg8[%c0_80, %c0_81], %104 {strides = array<i32>} : memref<32x128xf32, #tpu.memory_space<vmem>>, vector<32x128xf32>,
    return
  }
}

</mosaic_0001>

<bundles_post_ra>
// kernel: tpu_custom_call.1
= control target key start
LH: loop header
LB: loop body
LE: loop exit
PB: predicated region body
PF: predicated region fallthrough
CT: control target
= control target key end

     0   :  { %13 = vsyncpa [#allocation4], 0  ;;  %s2084_s0 = inlined_call_operand.hbm [shape: f32[2,16,128], index: 0, kind: input, shape index: {}]   ;;  %s2085_s1 = inlined_call_operand.hbm [shape: bf16[3,128,128], index: 1, kind: input, shape index: {}]   ;;  %s2086_s2 = inlined_call_operand.hbm [shape: f32[3,128,128], index: 2, kind: input, shape index: {}]   ;;  %s2087_s3 = inlined_call_operand.vmem [shape: f32[1,128], index: 3, kind: input, shape index: {}]   ;;  %s2088_s4 = inlined_call_operand.vmem [shape: f32[1,128], index: 4, kind: input, shape index: {}]   ;;  %s2089_s5 = inlined_call_operand.vmem [shape: f32[1,128], index: 5, kind: input, shape index: {}]   ;;  %s2090_s6 = inlined_call_operand.vmem [shape: f32[1,128], index: 6, kind: input, shape index: {}]   ;;  %s2091_s7 = inlined_call_operand.hbm [shape: f32[128,128], index: 7, kind: input, shape index: {}]   ;;  %s2092_s8 = inlined_call_operand.hbm [shape: f32[32,128], index: 8, kind: output, shape index: {}]  }
   0x1   :  { %14 = vsyncpa [#allocation7], 0 }
   0x2   :  { %15 = vsyncpa [#allocation10], 0 }
   0x3   :  { %16 = vsyncpa [#allocation5], 0  ;;  %s1848_s27 = smov [#allocation6]   ;;  %s1730_s9 = scalar_lea.hbm %s2085_s1, 3072 }
   0x4   :  { %s34_s28 = sshll.u32 %s1848_s27, 4  ;;  %p1731_p0 = scmp.ne.s32.totalorder %s2085_s1, %s1730_s9  ;;  %s35_s28 = int_to_ptr.vmem [resolvable:$true] %s34_s28 }
   0x5   :  { %p1734_p1 = scmp.lt.u32.totalorder %s1730_s9, %s2085_s1 }
   0x7   :  { %p1736_p2 = pnand %p1734_p1, %p1731_p0 }
   0x9   :  { %1739 = shalt.err (!%p1736_p2)
}
   0xa   :  { %s1740_s14 = scalar_lea.vmem %s35_s28, 3072  ;;  %p1745_p4 = scmp.lt.s32.totalorder %s35_s28, %s35_s28 }
   0xb   :  { %p1741_p3 = scmp.ne.s32.totalorder %s35_s28, %s1740_s14  ;;  %p1746_p5 = scmp.lt.s32.totalorder %s1740_s14, %s1740_s14 }
   0xd   :  { %p1747_p6 = por %p1746_p5, %p1745_p4 }
   0xf   :  { %p1748_p7 = pnand %p1747_p6, %p1741_p3 }
  0x11   :  { %1751 = shalt.err (!%p1748_p7)
}
  0x12   :  { %s1849_s15 = smov 64   ;;  %s1850_s16 = smov 4  }
  0x13   :  { %40 = dma.hbm_to_vmem [thread:$0]  %s2085_s1, 3072, %s35_s28, [#allocation7], %s1849_s15, %s1849_s15, %s1850_s16  }
  0x14   :  { %s1851_s19 = smov [#allocation3]   ;;  %s1752_s23 = scalar_lea.hbm %s2084_s0, 512 }
  0x15   :  { %s22_s20 = sshll.u32 %s1851_s19, 4  ;;  %p1753_p8 = scmp.ne.s32.totalorder %s2084_s0, %s1752_s23  ;;  %s23_s20 = int_to_ptr.vmem [resolvable:$true] %s22_s20 }
  0x16   :  { %p1756_p9 = scmp.lt.u32.totalorder %s1752_s23, %s2084_s0 }
  0x18   :  { %p1758_p10 = pnand %p1756_p9, %p1753_p8 }
  0x1a   :  { %1761 = shalt.err (!%p1758_p10)
}
  0x1b   :  { %s1762_s29 = scalar_lea.vmem %s23_s20, 512  ;;  %p1767_p12 = scmp.lt.s32.totalorder %s23_s20, %s23_s20 }
  0x1c   :  { %p1763_p11 = scmp.ne.s32.totalorder %s23_s20, %s1762_s29  ;;  %p1768_p13 = scmp.lt.s32.totalorder %s1762_s29, %s1762_s29 }
  0x1e   :  { %p1769_p0 = por %p1768_p13, %p1767_p12 }
  0x20   :  { %p1770_p1 = pnand %p1769_p0, %p1763_p11 }
  0x22   :  { %1773 = shalt.err (!%p1770_p1)
}
  0x23   :  { %s1852_s1 = smov 128   ;;  %s1853_s28 = smov 8  }
  0x24   :  { %28 = dma.hbm_to_vmem [thread:$0]  %s2084_s0, 512, %s23_s20, [#allocation4], %s1852_s1, %s1852_s1, %s1853_s28  }
  0x25   :  { %s1854_s10 = smov [#allocation8]   ;;  %s1855_s12 = smov [#allocation9]  }
  0x26   :  { %s46_s11 = sshll.u32 %s1854_s10, 4  ;;  %s66_s13 = sshll.u32 %s1855_s12, 4  ;;  %s47_s11 = int_to_ptr.vmem [resolvable:$true] %s46_s11  ;;  %s1932_s13 = int_to_ptr.vmem [resolvable:$true] %s66_s13 }
  0x27   :  { %s1774_s16 = scalar_lea.hbm %s2086_s2, 6144 }
  0x28   :  { %p1775_p2 = scmp.ne.s32.totalorder %s2086_s2, %s1774_s16  ;;  %p1778_p3 = scmp.lt.u32.totalorder %s1774_s16, %s2086_s2 }
  0x2a   :  { %p1780_p4 = pnand %p1778_p3, %p1775_p2 }
  0x2c   :  { %1783 = shalt.err (!%p1780_p4)
}
  0x2d   :  { %s1784_s0 = scalar_lea.vmem %s47_s11, 6144  ;;  %p1789_p6 = scmp.lt.s32.totalorder %s47_s11, %s47_s11 }
  0x2e   :  { %p1785_p5 = scmp.ne.s32.totalorder %s47_s11, %s1784_s0  ;;  %p1790_p7 = scmp.lt.s32.totalorder %s1784_s0, %s1784_s0 }
  0x30   :  { %p1791_p8 = por %p1790_p7, %p1789_p6 }
  0x32   :  { %p1792_p9 = pnand %p1791_p8, %p1785_p5 }
  0x34   :  { %1795 = shalt.err (!%p1792_p9)
}
  0x35   :  { %52 = dma.hbm_to_vmem [thread:$0]  %s2086_s2, 6144, %s47_s11, [#allocation7], %s1852_s1, %s1852_s1, %s1853_s28  }
  0x36   :  { %s1796_s25 = scalar_lea.hbm %s2091_s7, 2048 }
  0x37   :  { %p1797_p10 = scmp.ne.s32.totalorder %s2091_s7, %s1796_s25  ;;  %p1800_p11 = scmp.lt.u32.totalorder %s1796_s25, %s2091_s7 }
  0x39   :  { %p1802_p12 = pnand %p1800_p11, %p1797_p10 }
  0x3b   :  { %1805 = shalt.err (!%p1802_p12)
}
  0x3c   :  { %s1806_s9 = scalar_lea.vmem %s1932_s13, 2048  ;;  %p1811_p0 = scmp.lt.s32.totalorder %s1932_s13, %s1932_s13 }
  0x3d   :  { %p1807_p13 = scmp.ne.s32.totalorder %s1932_s13, %s1806_s9  ;;  %p1812_p1 = scmp.lt.s32.totalorder %s1806_s9, %s1806_s9 }
  0x3f   :  { %p1813_p2 = por %p1812_p1, %p1811_p0 }
  0x41   :  { %p1814_p3 = pnand %p1813_p2, %p1807_p13 }
  0x43   :  { %1817 = shalt.err (!%p1814_p3)
}
  0x44   :  { %72 = dma.hbm_to_vmem [thread:$0]  %s2091_s7, 2048, %s1932_s13, [#allocation10], %s1852_s1, %s1852_s1, %s1853_s28  }
  0x45   :  { %1840 = dma.done.wait [#allocation4], 512  }
  0x46   :  { %1841 = vsyncadd [#allocation4], 4294966784 }
  0x47   :  { %1842 = dma.done.wait [#allocation7], 9216  }
  0x48   :  { %1843 = vsyncadd [#allocation7], 4294958080 }
  0x49   :  { %1844 = dma.done.wait [#allocation10], 2048  }
  0x4a   :  { %1845 = vsyncadd [#allocation10], 4294965248  ;;  %v1856_v0 = vmov 0.0   ;;  %v1857_v1 = vmov 0.0|0.0   ;;  %v1702_v2 = vld [vmem:[#allocation6 + $0x40] sm:$0xff]   ;;  %v1703_v3 = vld [vmem:[#allocation6 + $0x48] sm:$0xff]  }
  0x4b   :  { %86 = vst [vmem:[#allocation2] sm:$0x1] %v1856_v0  ;;  %87 = vst [vmem:[#allocation2 + $0x18] sm:$0x1] %v1856_v0  ;;  %1530 = vmatprep.subr.bf16.mxu1 %v1857_v1  ;;  %1286 = vmatprep.subr.bf16.mxu0 %v1702_v2  ;;  %v1704_v4 = vld [vmem:[#allocation6 + $0x50] sm:$0xff]   ;;  %v1705_v5 = vld [vmem:[#allocation6 + $0x58] sm:$0xff]  }
  0x4c   :  { %88 = vst [vmem:[#allocation2 + $0x11] sm:$0x1] %v1856_v0  ;;  %89 = vst [vmem:[#allocation2 + $0x29] sm:$0x1] %v1856_v0  ;;  %1287 = vmatpush3.bf16.msra.mxu0 %v1702_v2  ;;  %v1974_v6 = vld [vmem:[#allocation3] sm:$0xff]  ;;  %v1976_v7 = vld [vmem:[#allocation3 + $0x8] sm:$0xff] }
  0x4d   :  { %1288 = vmatprep.subr.bf16.mxu0 %v1703_v3  ;;  %94 = vst [vmem:[#allocation2 + $0x1] sm:$0xff] %v1974_v6  ;;  %95 = vst [vmem:[#allocation2 + $0x9] sm:$0xff] %v1976_v7  ;;  %v124_v8 = vpack.c.bf16 %v1976_v7, %v1974_v6  ;;  %v1982_v9 = vld [vmem:[#allocation3 + $0x10] sm:$0xff]  ;;  %v1984_v10 = vld [vmem:[#allocation3 + $0x18] sm:$0xff]  ;;  %vm1858_vm0 = vmmov 0   ;;  %vm483_vm1 = vcmask 1040384  }
  0x4e   :  { %96 = vst [vmem:[#allocation2 + $0x19] sm:$0xff] %v1982_v9  ;;  %97 = vst [vmem:[#allocation2 + $0x21] sm:$0xff] %v1984_v10  ;;  %v1706_v11 = vld [vmem:[#allocation6 + $0x60] sm:$0xff]   ;;  %v1707_v12 = vld [vmem:[#allocation6 + $0x68] sm:$0xff]   ;;  %v125_v23 = vpack.c.bf16 %v1984_v10, %v1982_v9  ;;  %1378 = vmatprep.mubr.msk.f32.mxu1 %vm1858_vm0, %v1856_v0  ;;  %s1859_s16 = smov [#allocation11]  }
  0x4f   :  { %1302 = vmatprep.mubr.bf16.mxu0 %v124_v8  ;;  %v1708_v13 = vld [vmem:[#allocation6 + $0x70] sm:$0xff]   ;;  %v1709_v14 = vld [vmem:[#allocation6 + $0x78] sm:$0xff]   ;;  %v1710_v15 = vld [vmem:[#allocation6] sm:$0xff]   ;;  %s1120_s17 = sshll.u32 %s1859_s16, 4  ;;  %s1121_s17 = int_to_ptr.vmem [resolvable:$true] %s1120_s17 }
  0x50   :  { %1289 = vmatpush3.bf16.msra.mxu0 %v1703_v3  ;;  %v485_v18 = vld [vmem:[#allocation9] sm:$0xff]  ;;  %v486_v19 = vld [vmem:[#allocation9 + $0x8] sm:$0xff]  ;;  %v487_v21 = vld [vmem:[#allocation9 + $0x10] sm:$0xff]  ;;  %p1823_p5 = scmp.lt.s32.totalorder %s1121_s17, %s1121_s17 }
  0x51   :  { %1290 = vmatprep.subr.bf16.mxu0 %v1704_v4  ;;  %v1988_v20 = vpack.c.bf16 %v486_v19, %v485_v18  ;;  %v488_v22 = vld [vmem:[#allocation9 + $0x18] sm:$0xff]  ;;  %v1711_v25 = vld [vmem:[#allocation6 + $0x8] sm:$0xff]   ;;  %v1712_v27 = vld [vmem:[#allocation6 + $0x10] sm:$0xff]  }
  0x52   :  { %v1994_v26 = vpack.c.bf16 %v488_v22, %v487_v21  ;;  %v1713_v28 = vld [vmem:[#allocation6 + $0x18] sm:$0xff]   ;;  %v1714_v29 = vld [vmem:[#allocation6 + $0x20] sm:$0xff]   ;;  %v1715_v30 = vld [vmem:[#allocation6 + $0x28] sm:$0xff]  }
  0x53   :  { %1532 = vmatpush3.bf16.msra.mxu1 %v1988_v20  ;;  %v1716_v31 = vld [vmem:[#allocation6 + $0x30] sm:$0xff]   ;;  %v1717_v32 = vld [vmem:[#allocation6 + $0x38] sm:$0xff]   ;;  %v1718_v35 = vld [vmem:[#allocation6 + $0x80] sm:$0xff]  }
  0x54   :  { %1291 = vmatpush3.bf16.msra.mxu0 %v1704_v4  ;;  %v98_v16 = vld [vmem:[#allocation2] sm:$0xff]  ;;  %v99_v17 = vld [vmem:[#allocation2 + $0x8] sm:$0xff]  ;;  %1533 = vmatprep.subr.bf16.mxu1 %v1857_v1  ;;  %v1719_v40 = vld [vmem:[#allocation6 + $0x88] sm:$0xff]  }
  0x55   :  { %1292 = vmatprep.subr.bf16.mxu0 %v1705_v5  ;;  %v102_v24 = vpack.c.bf16 %v99_v17, %v98_v16  ;;  %v100_v33 = vld [vmem:[#allocation2 + $0x18] sm:$0xff]  ;;  %v101_v34 = vld [vmem:[#allocation2 + $0x20] sm:$0xff]  ;;  %v338_v37 = vld [vmem:[#allocation2 + $0xa] sm:$0xff] }
  0x56   :  { %v337_v36 = vld [vmem:[#allocation2 + $0x2] sm:$0xff]  ;;  %v103_v38 = vpack.c.bf16 %v101_v34, %v100_v33  ;;  %v1722_v43 = vld [vmem:[#allocation6 + $0xa0] sm:$0xff]   ;;  %v1723_v44 = vld [vmem:[#allocation6 + $0xa8] sm:$0xff]  }
  0x57   :  { %1535 = vmatpush3.bf16.msra.mxu1 %v1994_v26  ;;  %v341_v39 = vpack.c.bf16 %v338_v37, %v337_v36  ;;  %v1720_v41 = vld [vmem:[#allocation6 + $0x90] sm:$0xff]   ;;  %v1721_v42 = vld [vmem:[#allocation6 + $0x98] sm:$0xff]   ;;  %v489_v50 = vld [vmem:[#allocation9 + $0x20] sm:$0xff] }
  0x58   :  { %1293 = vmatpush3.bf16.msra.mxu0 %v1705_v5  ;;  %1536 = vmatprep.subr.bf16.mxu1 %v1857_v1  ;;  %v1724_v45 = vld [vmem:[#allocation6 + $0xb0] sm:$0xff]   ;;  %v1725_v46 = vld [vmem:[#allocation6 + $0xb8] sm:$0xff]   ;;  %v490_v51 = vld [vmem:[#allocation9 + $0x28] sm:$0xff] }
  0x59   :  { %1294 = vmatprep.subr.bf16.mxu0 %v1706_v11  ;;  %v339_v47 = vld [vmem:[#allocation2 + $0x1a] sm:$0xff]  ;;  %v340_v48 = vld [vmem:[#allocation2 + $0x22] sm:$0xff]  ;;  %v1537_v52 = vpack.c.bf16 %v490_v51, %v489_v50  ;;  %v493_v56 = vld [vmem:[#allocation9 + $0x40] sm:$0xff] }
  0x5a   :  { %v342_v49 = vpack.c.bf16 %v340_v48, %v339_v47  ;;  %v491_v53 = vld [vmem:[#allocation9 + $0x30] sm:$0xff]  ;;  %v492_v54 = vld [vmem:[#allocation9 + $0x38] sm:$0xff]  ;;  %v494_v57 = vld [vmem:[#allocation9 + $0x48] sm:$0xff] }
  0x5b   :  { %1538 = vmatpush3.bf16.msra.mxu1 %v1537_v52  ;;  %v1540_v55 = vpack.c.bf16 %v492_v54, %v491_v53  ;;  %v1543_v58 = vpack.c.bf16 %v494_v57, %v493_v56  ;;  %v495_v59 = vld [vmem:[#allocation9 + $0x50] sm:$0xff]  ;;  %v496_v60 = vld [vmem:[#allocation9 + $0x58] sm:$0xff]  ;;  %v497_v62 = vld [vmem:[#allocation9 + $0x60] sm:$0xff] }
  0x5c   :  { %1295 = vmatpush3.bf16.msra.mxu0 %v1706_v11  ;;  %1539 = vmatprep.subr.bf16.mxu1 %v1857_v1  ;;  %v1546_v61 = vpack.c.bf16 %v496_v60, %v495_v59  ;;  %v498_v63 = vld [vmem:[#allocation9 + $0x68] sm:$0xff]  ;;  %v499_v3 = vld [vmem:[#allocation9 + $0x70] sm:$0xff]  ;;  %v500_v4 = vld [vmem:[#allocation9 + $0x78] sm:$0xff] }
  0x5d   :  { %1296 = vmatprep.subr.bf16.mxu0 %v1707_v12  ;;  %v1549_v2 = vpack.c.bf16 %v498_v63, %v497_v62  ;;  %v1552_v5 = vpack.c.bf16 %v500_v4, %v499_v3  ;;  %v650_v36 = vld [vmem:[#allocation8 + $0x88] sm:$0xff]  ;;  %v657_v47 = vld [vmem:[#allocation8 + $0xc0] sm:$0xff]  ;;  %v659_v50 = vld [vmem:[#allocation8 + $0xd0] sm:$0xff]  ;;  %v576_v62 = vlaneseq }
  0x5e   :  { %v658_v48 = vld [vmem:[#allocation8 + $0xc8] sm:$0xff]  ;;  %v660_v51 = vld [vmem:[#allocation8 + $0xd8] sm:$0xff]  ;;  %v661_v53 = vld [vmem:[#allocation8 + $0xe0] sm:$0xff] }
  0x5f   :  { %1541 = vmatpush3.bf16.msra.mxu1 %v1540_v55  ;;  %v662_v54 = vld [vmem:[#allocation8 + $0xe8] sm:$0xff]  ;;  %v663_v56 = vld [vmem:[#allocation8 + $0xf0] sm:$0xff]  ;;  %v664_v57 = vld [vmem:[#allocation8 + $0xf8] sm:$0xff]  ;;  %v2036_v63 = vshrl.u32 %v576_v62, 7 }
  0x60   :  { %1297 = vmatpush3.bf16.msra.mxu0 %v1707_v12  ;;  %1542 = vmatprep.subr.bf16.mxu1 %v1857_v1  ;;  %v628_v59 = vld [vmem:[#allocation8] sm:$0xff]  ;;  %v629_v60 = vld [vmem:[#allocation8 + $0x8] sm:$0xff]  ;;  %v842_v62 = vld [vmem:[#allocation8 + $0x110] sm:$0xff] }
  0x61   :  { %1298 = vmatprep.subr.bf16.mxu0 %v1708_v13 }
  0x63   :  { %1544 = vmatpush3.bf16.msra.mxu1 %v1543_v58 }
  0x64   :  { %1299 = vmatpush3.bf16.msra.mxu0 %v1708_v13  ;;  %1545 = vmatprep.subr.bf16.mxu1 %v1857_v1 }
  0x65   :  { %1300 = vmatprep.subr.bf16.mxu0 %v1709_v14 }
  0x67   :  { %1547 = vmatpush3.bf16.msra.mxu1 %v1546_v61 }
  0x68   :  { %1301 = vmatpush3.bf16.msra.mxu0 %v1709_v14  ;;  %1548 = vmatprep.subr.bf16.mxu1 %v1857_v1 }
  0x69   :  { %1306 = vmatprep.subr.bf16.mxu0 %v1710_v15 }
  0x6b   :  { %1303 = vmatmul.mubr.bf16.vlgmr.msra.gmra.mrb[0].mxu0 %v125_v23  ;;  %1550 = vmatpush3.bf16.msra.mxu1 %v1549_v2 }
  0x6c   :  { %1307 = vmatpush3.bf16.msra.mxu0 %v1710_v15  ;;  %1322 = vmatprep.mubr.bf16.mxu0 %v102_v24 }
  0x6d   :  { %1308 = vmatprep.subr.bf16.mxu0 %v1711_v25  ;;  %1551 = vmatprep.subr.bf16.mxu1 %v1857_v1 }
  0x6f   :  { %1553 = vmatpush3.bf16.msra.mxu1 %v1552_v5 }
  0x70   :  { %1309 = vmatpush3.bf16.msra.mxu0 %v1711_v25 }
  0x71   :  { %1310 = vmatprep.subr.bf16.mxu0 %v1712_v27 }
  0x74   :  { %1311 = vmatpush3.bf16.msra.mxu0 %v1712_v27 }
  0x75   :  { %1312 = vmatprep.subr.bf16.mxu0 %v1713_v28 }
  0x78   :  { %1313 = vmatpush3.bf16.msra.mxu0 %v1713_v28 }
  0x79   :  { %1314 = vmatprep.subr.bf16.mxu0 %v1714_v29 }
  0x7c   :  { %1315 = vmatpush3.bf16.msra.mxu0 %v1714_v29 }
  0x7d   :  { %1316 = vmatprep.subr.bf16.mxu0 %v1715_v30 }
  0x80   :  { %1317 = vmatpush3.bf16.msra.mxu0 %v1715_v30 }
  0x81   :  { %1318 = vmatprep.subr.bf16.mxu0 %v1716_v31 }
  0x84   :  { %1319 = vmatpush3.bf16.msra.mxu0 %v1716_v31 }
  0x85   :  { %1320 = vmatprep.subr.bf16.mxu0 %v1717_v32 }
  0x88   :  { %1321 = vmatpush3.bf16.msra.mxu0 %v1717_v32 }
  0x89   :  { %1326 = vmatprep.subr.bf16.mxu0 %v1718_v35 }
  0x8b   :  { %1323 = vmatmul.mubr.bf16.vlgmr.msra.gmra.mrb[0].mxu0 %v103_v38  ;;  %v651_v38 = vld [vmem:[#allocation8 + $0x90] sm:$0xff] }
  0x8c   :  { %1327 = vmatpush3.bf16.msra.mxu0 %v1718_v35  ;;  %1342 = vmatprep.mubr.bf16.mxu0 %v341_v39  ;;  %v649_v35 = vld [vmem:[#allocation8 + $0x80] sm:$0xff]  ;;  %v652_v39 = vld [vmem:[#allocation8 + $0x98] sm:$0xff] }
  0x8d   :  { %1328 = vmatprep.subr.bf16.mxu0 %v1719_v40  ;;  %v1554_v37 = vpack.c.bf16 %v650_v36, %v649_v35 }
  0x8f   :  { %1555 = vmatprep.subr.bf16.mxu1 %v1554_v37 }
  0x90   :  { %1329 = vmatpush3.bf16.msra.mxu0 %v1719_v40  ;;  %v1558_v40 = vpack.c.bf16 %v652_v39, %v651_v38 }
  0x91   :  { %1330 = vmatprep.subr.bf16.mxu0 %v1720_v41 }
  0x94   :  { %1331 = vmatpush3.bf16.msra.mxu0 %v1720_v41  ;;  %v653_v41 = vld [vmem:[#allocation8 + $0xa0] sm:$0xff] }
  0x95   :  { %1332 = vmatprep.subr.bf16.mxu0 %v1721_v42 }
  0x98   :  { %1333 = vmatpush3.bf16.msra.mxu0 %v1721_v42  ;;  %v654_v42 = vld [vmem:[#allocation8 + $0xa8] sm:$0xff] }
  0x99   :  { %1334 = vmatprep.subr.bf16.mxu0 %v1722_v43 }
  0x9c   :  { %1335 = vmatpush3.bf16.msra.mxu0 %v1722_v43  ;;  %v1562_v43 = vpack.c.bf16 %v654_v42, %v653_v41  ;;  %v633_v41 = vld [vmem:[#allocation8 + $0x28] sm:$0xff] }
  0x9d   :  { %1336 = vmatprep.subr.bf16.mxu0 %v1723_v44 }
  0xa0   :  { %1337 = vmatpush3.bf16.msra.mxu0 %v1723_v44  ;;  %v655_v44 = vld [vmem:[#allocation8 + $0xb0] sm:$0xff] }
  0xa1   :  { %1338 = vmatprep.subr.bf16.mxu0 %v1724_v45 }
  0xa4   :  { %1339 = vmatpush3.bf16.msra.mxu0 %v1724_v45  ;;  %v656_v45 = vld [vmem:[#allocation8 + $0xb8] sm:$0xff] }
  0xa5   :  { %1340 = vmatprep.subr.bf16.mxu0 %v1725_v46 }
  0xa8   :  { %1341 = vmatpush3.bf16.msra.mxu0 %v1725_v46  ;;  %v1566_v46 = vpack.c.bf16 %v656_v45, %v655_v44  ;;  %v635_v44 = vld [vmem:[#allocation8 + $0x38] sm:$0xff] }
  0xa9   :  { %1650 = vmatprep.subr.bf16.mxu0 %v1857_v1 }
  0xab   :  { %1343 = vmatmul.mubr.bf16.vlgmr.msra.gmra.mrb[0].mxu0 %v342_v49  ;;  %v1570_v49 = vpack.c.bf16 %v658_v48, %v657_v47  ;;  %v636_v47 = vld [vmem:[#allocation8 + $0x40] sm:$0xff]  ;;  %v637_v48 = vld [vmem:[#allocation8 + $0x48] sm:$0xff] }
  0xac   :  { %1652 = vmatpush3.bf16.msra.mxu0 %v1988_v20  ;;  %1527 = vmatprep.mubr.msk.f32.mxu0 %vm1858_vm0, %v1856_v0 }
  0xad   :  { %1653 = vmatprep.subr.bf16.mxu0 %v1857_v1 }
  0xb0   :  { %1655 = vmatpush3.bf16.msra.mxu0 %v1994_v26 }
  0xb1   :  { %1656 = vmatprep.subr.bf16.mxu0 %v1857_v1 }
  0xb4   :  { %1658 = vmatpush3.bf16.msra.mxu0 %v1537_v52  ;;  %v1574_v52 = vpack.c.bf16 %v660_v51, %v659_v50  ;;  %v638_v50 = vld [vmem:[#allocation8 + $0x50] sm:$0xff]  ;;  %v639_v51 = vld [vmem:[#allocation8 + $0x58] sm:$0xff] }
  0xb5   :  { %1659 = vmatprep.subr.bf16.mxu0 %v1857_v1 }
  0xb8   :  { %1661 = vmatpush3.bf16.msra.mxu0 %v1540_v55  ;;  %v1578_v55 = vpack.c.bf16 %v662_v54, %v661_v53  ;;  %v640_v53 = vld [vmem:[#allocation8 + $0x60] sm:$0xff]  ;;  %v641_v54 = vld [vmem:[#allocation8 + $0x68] sm:$0xff] }
  0xb9   :  { %1662 = vmatprep.subr.bf16.mxu0 %v1857_v1 }
  0xbc   :  { %1664 = vmatpush3.bf16.msra.mxu0 %v1543_v58  ;;  %v1582_v58 = vpack.c.bf16 %v664_v57, %v663_v56  ;;  %v642_v56 = vld [vmem:[#allocation8 + $0x70] sm:$0xff]  ;;  %v643_v57 = vld [vmem:[#allocation8 + $0x78] sm:$0xff] }
  0xbd   :  { %1665 = vmatprep.subr.bf16.mxu0 %v1857_v1 }
  0xc0   :  { %1667 = vmatpush3.bf16.msra.mxu0 %v1546_v61  ;;  %v1586_v61 = vpack.c.bf16 %v629_v60, %v628_v59  ;;  %v840_v59 = vld [vmem:[#allocation8 + $0x100] sm:$0xff]  ;;  %v841_v60 = vld [vmem:[#allocation8 + $0x108] sm:$0xff] }
  0xc1   :  { %1668 = vmatprep.subr.bf16.mxu0 %v1857_v1 }
  0xc4   :  { %1670 = vmatpush3.bf16.msra.mxu0 %v1549_v2  ;;  %v578_v2 = vsub.s32 0, %v2036_v63 }
  0xc5   :  { %1671 = vmatprep.subr.bf16.mxu0 %v1857_v1 }
  0xc8   :  { %1673 = vmatpush3.bf16.msra.mxu0 %v1552_v5 }
 0x17e   :  { %v2015_v8 = vpop.f32.mrb[0].mxu0 }
 0x17f   :  { %v2017_v0 = vpop.f32.mrb[1].mxu0  ;;  %v472_v1 = vmul.f32 %v2015_v8, %v2015_v8 }
 0x180   :  { %v2019_v11 = vpop.f32.mrb[2].mxu0  ;;  %v470_v13 = vmul.f32 %v2017_v0, %v2017_v0 }
 0x181   :  { %v2021_v12 = vpop.f32.mrb[3].mxu0  ;;  %v473_v18 = vmul.f32 %v2019_v11, %v2019_v11 }
 0x182   :  { %v461_v14 = vadd.f32 %v2021_v12, %v2017_v0  ;;  %v471_v15 = vmul.f32 %v2021_v12, %v2021_v12 }
 0x184   :  { %v462_v16 = vadd.f32 %v2015_v8, %v461_v14  ;;  %v474_v17 = vadd.f32 %v471_v15, %v470_v13 }
 0x186   :  { %v463_v19 = vadd.f32 %v2019_v11, %v462_v16  ;;  %v475_v20 = vadd.f32 %v474_v17, %v472_v1 }
 0x188   :  { %v464_v21 = vrot.slane %v463_v19, 4  ;;  %v476_v22 = vadd.f32 %v475_v20, %v473_v18  ;;  %v588_v20 = vsub.s32 1, %v2036_v63 }
 0x18a   :  { %v465_v23 = vadd.f32 %v464_v21, %v463_v19  ;;  %v477_v24 = vrot.slane %v476_v22, 4 }
 0x18c   :  { %v466_v25 = vrot.slane %v465_v23, 2  ;;  %v478_v26 = vadd.f32 %v477_v24, %v476_v22 }
 0x18e   :  { %v467_v27 = vadd.f32 %v466_v25, %v465_v23  ;;  %v479_v28 = vrot.slane %v478_v26, 2  ;;  %v1158_v23 = vld [vmem:[%s2087_s3] ss:$0 sm:$0xff] }
 0x190   :  { %v468_v29 = vrot.slane %v467_v27, 1  ;;  %v480_v30 = vadd.f32 %v479_v28, %v478_v26 }
 0x192   :  { %v481_v31 = vrot.slane %v480_v30, 1  ;;  %v469_v32 = vadd.f32 %v468_v29, %v467_v27 }
 0x194   :  { %v482_v33 = vadd.f32 %v481_v31, %v480_v30 }
 0x196   :  { %v484_v34 = vsel %vm483_vm1, %v469_v32, %v482_v33  ;;  %v630_v33 = vld [vmem:[#allocation8 + $0x10] sm:$0xff] }
 0x197   :  { %1379 = vmatmul.mubr.f32.vlgmr.msra.gmra.mrb[0].mxu1 %v484_v34  ;;  %v631_v34 = vld [vmem:[#allocation8 + $0x18] sm:$0xff] }
 0x198   :  { %1557 = vmatpush3.bf16.msra.mxu1 %v1554_v37  ;;  %v1590_v39 = vpack.c.bf16 %v631_v34, %v630_v33 }
 0x199   :  { %1559 = vmatprep.subr.bf16.mxu1 %v1558_v40 }
 0x19c   :  { %1561 = vmatpush3.bf16.msra.mxu1 %v1558_v40  ;;  %v632_v40 = vld [vmem:[#allocation8 + $0x20] sm:$0xff] }
 0x19d   :  { %1563 = vmatprep.subr.bf16.mxu1 %v1562_v43  ;;  %v1594_v42 = vpack.c.bf16 %v633_v41, %v632_v40 }
 0x1a0   :  { %1565 = vmatpush3.bf16.msra.mxu1 %v1562_v43  ;;  %v634_v43 = vld [vmem:[#allocation8 + $0x30] sm:$0xff] }
 0x1a1   :  { %1567 = vmatprep.subr.bf16.mxu1 %v1566_v46 }
 0x1a4   :  { %1569 = vmatpush3.bf16.msra.mxu1 %v1566_v46  ;;  %v1598_v46 = vpack.c.bf16 %v635_v44, %v634_v43 }
 0x1a5   :  { %1571 = vmatprep.subr.bf16.mxu1 %v1570_v49 }
 0x1a8   :  { %1573 = vmatpush3.bf16.msra.mxu1 %v1570_v49  ;;  %v1602_v49 = vpack.c.bf16 %v637_v48, %v636_v47 }
 0x1a9   :  { %1575 = vmatprep.subr.bf16.mxu1 %v1574_v52 }
 0x1ac   :  { %1577 = vmatpush3.bf16.msra.mxu1 %v1574_v52  ;;  %v1606_v52 = vpack.c.bf16 %v639_v51, %v638_v50 }
 0x1ad   :  { %1579 = vmatprep.subr.bf16.mxu1 %v1578_v55 }
 0x1b0   :  { %1581 = vmatpush3.bf16.msra.mxu1 %v1578_v55  ;;  %v1610_v55 = vpack.c.bf16 %v641_v54, %v640_v53 }
 0x1b1   :  { %1583 = vmatprep.subr.bf16.mxu1 %v1582_v58 }
 0x1b4   :  { %1585 = vmatpush3.bf16.msra.mxu1 %v1582_v58  ;;  %v1614_v58 = vpack.c.bf16 %v643_v57, %v642_v56 }
 0x1b5   :  { %1587 = vmatprep.subr.bf16.mxu1 %v1586_v61 }
 0x26a   :  { %v567_v3 = vpop.f32.mrb[0].mxu1 }
 0x26b   :  { %v571_v4 = vmul.f32 %v567_v3, %v567_v3  ;;  %v579_v5 = vrot.slane %v567_v3, %v578_v2  ;;  %v1380_v13 = vpop.f32.mrb[1].mxu1 }
 0x26c   :  { %v844_v13 = vld [vmem:[#allocation8 + $0x120] sm:$0xff] }
 0x26d   :  { %v573_v14 = vrot.slane %v571_v4, 7  ;;  %v580_v15 = vsub.f32 %v2017_v0, %v579_v5  ;;  %v581_v1 = vsub.f32 %v2021_v12, %v579_v5  ;;  %v582_v16 = vsub.f32 %v2015_v8, %v579_v5  ;;  %v1159_v8 = vld [vmem:[%s2088_s4] ss:$0 sm:$0xff] }
 0x26e   :  { %v583_v17 = vsub.f32 %v2019_v11, %v579_v5 }
 0x26f   :  { %v575_v18 = vsub.f32 %v567_v3, %v573_v14  ;;  %v843_v3 = vld [vmem:[#allocation8 + $0x118] sm:$0xff]  ;;  %v845_v14 = vld [vmem:[#allocation8 + $0x128] sm:$0xff] }
 0x270   :  { %v1622_v4 = vpack.c.bf16 %v843_v3, %v842_v62 }
 0x271   :  { %v584_v19 = vadd.f32 1e-05, %v575_v18  ;;  %v847_v18 = vld [vmem:[#allocation8 + $0x138] sm:$0xff] }
 0x273   :  { %1726 = vrsqrt.f32 %v584_v19 }
 0x27d   :  { %v1727_v21 = vpop.eup %1726 }
 0x27e   :  { %v589_v22 = vrot.slane %v1727_v21, %v588_v20 }
 0x280   :  { %v590_v0 = vmul.f32 %v589_v22, %v580_v15  ;;  %v591_v24 = vmul.f32 %v589_v22, %v581_v1  ;;  %v592_v12 = vmul.f32 %v589_v22, %v582_v16  ;;  %v593_v25 = vmul.f32 %v589_v22, %v583_v17  ;;  %v846_v17 = vld [vmem:[#allocation8 + $0x130] sm:$0xff]  ;;  %v848_v22 = vld [vmem:[#allocation8 + $0x140] sm:$0xff] }
 0x281   :  { %v1626_v1 = vpack.c.bf16 %v845_v14, %v844_v13  ;;  %v1630_v21 = vpack.c.bf16 %v847_v18, %v846_v17 }
 0x282   :  { %v601_v11 = vmul.f32 %v1158_v23, %v590_v0  ;;  %v602_v26 = vmul.f32 %v1158_v23, %v591_v24  ;;  %v603_v27 = vmul.f32 %v1158_v23, %v592_v12  ;;  %v604_v28 = vmul.f32 %v1158_v23, %v593_v25  ;;  %v849_v23 = vld [vmem:[#allocation8 + $0x148] sm:$0xff]  ;;  %v850_v24 = vld [vmem:[#allocation8 + $0x150] sm:$0xff]  ;;  %v851_v12 = vld [vmem:[#allocation8 + $0x158] sm:$0xff] }
 0x283   :  { %v1634_v0 = vpack.c.bf16 %v849_v23, %v848_v22  ;;  %v1638_v25 = vpack.c.bf16 %v851_v12, %v850_v24 }
 0x284   :  { %v612_v29 = vadd.f32 %v1159_v8, %v601_v11  ;;  %v613_v30 = vadd.f32 %v1159_v8, %v602_v26  ;;  %v614_v31 = vadd.f32 %v1159_v8, %v603_v27  ;;  %v615_v32 = vadd.f32 %v1159_v8, %v604_v28  ;;  %v852_v8 = vld [vmem:[#allocation8 + $0x160] sm:$0xff]  ;;  %v853_v11 = vld [vmem:[#allocation8 + $0x168] sm:$0xff]  ;;  %v854_v27 = vld [vmem:[#allocation8 + $0x170] sm:$0xff] }
 0x285   :  { %v1642_v26 = vpack.c.bf16 %v853_v11, %v852_v8  ;;  %v855_v28 = vld [vmem:[#allocation8 + $0x178] sm:$0xff] }
 0x286   :  { %v616_v35 = vmax.f32 %v612_v29, 0.0  ;;  %v617_v36 = vmax.f32 %v613_v30, 0.0  ;;  %v618_v37 = vmax.f32 %v614_v31, 0.0  ;;  %v619_v38 = vmax.f32 %v615_v32, 0.0 }
 0x287   :  { %v1646_v29 = vpack.c.bf16 %v855_v28, %v854_v27 }
 0x288   :  { %620 = vst [vmem:[#allocation2 + $0x1] sm:$0xff] %v616_v35  ;;  %621 = vst [vmem:[#allocation2 + $0x9] sm:$0xff] %v617_v36  ;;  %1413 = vmatprep.mubr.f32.mxu1 %v616_v35 }
 0x289   :  { %622 = vst [vmem:[#allocation2 + $0x19] sm:$0xff] %v618_v37  ;;  %623 = vst [vmem:[#allocation2 + $0x21] sm:$0xff] %v619_v38  ;;  %1414 = vmatmul.mubr.f32.vlgmr.msra.gmra.mrb[2].mxu1 %v617_v36 }
 0x28a   :  { %1589 = vmatpush3.bf16.msra.mxu1 %v1586_v61  ;;  %1416 = vmatprep.mubr.f32.mxu1 %v618_v37  ;;  %v1618_v61 = vpack.c.bf16 %v841_v60, %v840_v59 }
 0x28b   :  { %1591 = vmatprep.subr.bf16.mxu1 %v1590_v39 }
 0x28d   :  { %1417 = vmatmul.mubr.f32.gmra.mrb[4].mxu1 %v619_v38 }
 0x28e   :  { %1593 = vmatpush3.bf16.msra.mxu1 %v1590_v39 }
 0x28f   :  { %v624_v45 = vld [vmem:[#allocation2] sm:$0xff]  ;;  %1595 = vmatprep.subr.bf16.mxu1 %v1594_v42  ;;  %v625_v5 = vld [vmem:[#allocation2 + $0x8] sm:$0xff] }
 0x290   :  { %1451 = vmatprep.mubr.f32.mxu1 %v624_v45  ;;  %v626_v15 = vld [vmem:[#allocation2 + $0x18] sm:$0xff]  ;;  %v627_v16 = vld [vmem:[#allocation2 + $0x20] sm:$0xff]  ;;  %v836_v30 = vld [vmem:[#allocation2 + $0xa] sm:$0xff] }
 0x291   :  { %v835_v19 = vld [vmem:[#allocation2 + $0x2] sm:$0xff]  ;;  %v837_v31 = vld [vmem:[#allocation2 + $0x1a] sm:$0xff] }
 0x292   :  { %1597 = vmatpush3.bf16.msra.mxu1 %v1594_v42  ;;  %v838_v32 = vld [vmem:[#allocation2 + $0x22] sm:$0xff] }
 0x293   :  { %1599 = vmatprep.subr.bf16.mxu1 %v1598_v46 }
 0x296   :  { %1601 = vmatpush3.bf16.msra.mxu1 %v1598_v46 }
 0x297   :  { %1603 = vmatprep.subr.bf16.mxu1 %v1602_v49 }
 0x29a   :  { %1605 = vmatpush3.bf16.msra.mxu1 %v1602_v49 }
 0x29b   :  { %1607 = vmatprep.subr.bf16.mxu1 %v1606_v52 }
 0x29e   :  { %1609 = vmatpush3.bf16.msra.mxu1 %v1606_v52 }
 0x29f   :  { %1611 = vmatprep.subr.bf16.mxu1 %v1610_v55 }
 0x2a2   :  { %1613 = vmatpush3.bf16.msra.mxu1 %v1610_v55 }
 0x2a3   :  { %1615 = vmatprep.subr.bf16.mxu1 %v1614_v58 }
 0x2a6   :  { %1617 = vmatpush3.bf16.msra.mxu1 %v1614_v58 }
 0x2a7   :  { %1619 = vmatprep.subr.bf16.mxu1 %v1618_v61 }
 0x2a9   :  { %1452 = vmatmul.mubr.f32.vlgmr.msra.gmra.mrb[2].mxu1 %v625_v5 }
 0x2aa   :  { %1454 = vmatprep.mubr.f32.mxu1 %v626_v15  ;;  %1621 = vmatpush3.bf16.msra.mxu1 %v1618_v61 }
 0x2ab   :  { %1623 = vmatprep.subr.bf16.mxu1 %v1622_v4 }
 0x2ad   :  { %1455 = vmatmul.mubr.f32.gmra.mrb[4].mxu1 %v627_v16 }
 0x2ae   :  { %1625 = vmatpush3.bf16.msra.mxu1 %v1622_v4  ;;  %1489 = vmatprep.mubr.f32.mxu1 %v835_v19  ;;  %v1160_v19 = vld [vmem:[%s2089_s5] ss:$0 sm:$0xff]  ;;  %s1818_s5 = scalar_lea.vmem %s1121_s17, 512 }
 0x2af   :  { %1627 = vmatprep.subr.bf16.mxu1 %v1626_v1  ;;  %p1819_p4 = scmp.ne.s32.totalorder %s1121_s17, %s1818_s5  ;;  %p1824_p6 = scmp.lt.s32.totalorder %s1818_s5, %s1818_s5 }
 0x2b1   :  { %p1825_p7 = por %p1824_p6, %p1823_p5 }
 0x2b2   :  { %1629 = vmatpush3.bf16.msra.mxu1 %v1626_v1 }
 0x2b3   :  { %1631 = vmatprep.subr.bf16.mxu1 %v1630_v21  ;;  %p1826_p8 = pnand %p1825_p7, %p1819_p4 }
 0x2b6   :  { %1633 = vmatpush3.bf16.msra.mxu1 %v1630_v21 }
 0x2b7   :  { %1635 = vmatprep.subr.bf16.mxu1 %v1634_v0 }
 0x2ba   :  { %1637 = vmatpush3.bf16.msra.mxu1 %v1634_v0  ;;  %v1161_v0 = vld [vmem:[%s2090_s6] ss:$0 sm:$0xff] }
 0x2bb   :  { %1639 = vmatprep.subr.bf16.mxu1 %v1638_v25 }
 0x2be   :  { %1641 = vmatpush3.bf16.msra.mxu1 %v1638_v25 }
 0x2bf   :  { %1643 = vmatprep.subr.bf16.mxu1 %v1642_v26 }
 0x2c2   :  { %1645 = vmatpush3.bf16.msra.mxu1 %v1642_v26 }
 0x2c3   :  { %1647 = vmatprep.subr.bf16.mxu1 %v1646_v29 }
 0x2c6   :  { %1649 = vmatpush3.bf16.msra.mxu1 %v1646_v29 }
 0x2c9   :  { %1490 = vmatmul.mubr.f32.vlgmr.msra.gmra.mrb[2].mxu1 %v836_v30 }
 0x2ca   :  { %1492 = vmatprep.mubr.f32.mxu1 %v837_v31 }
 0x2cd   :  { %1493 = vmatmul.mubr.f32.gmra.mrb[4].mxu1 %v838_v32 }
 0x39c   :  { %v1491_v33 = vpop.f32.mrb[2].mxu1 }
 0x39d   :  { %v955_v34 = vmul.f32 %v1491_v33, %v1491_v33  ;;  %v922_v35 = vpop.f32.mrb[3].mxu1 }
 0x39e   :  { %v945_v36 = vadd.f32 %v1491_v33, %v922_v35  ;;  %v954_v37 = vmul.f32 %v922_v35, %v922_v35 }
 0x3a0   :  { %v958_v38 = vadd.f32 %v955_v34, %v954_v37  ;;  %v1494_v39 = vpop.f32.mrb[4].mxu1 }
 0x3a1   :  { %v932_v40 = vpop.f32.mrb[5].mxu1  ;;  %v957_v43 = vmul.f32 %v1494_v39, %v1494_v39 }
 0x3a2   :  { %v946_v41 = vadd.f32 %v945_v36, %v932_v40  ;;  %v956_v42 = vmul.f32 %v932_v40, %v932_v40 }
 0x3a4   :  { %v947_v44 = vadd.f32 %v1494_v39, %v946_v41  ;;  %v959_v45 = vadd.f32 %v958_v38, %v956_v42 }
 0x3a6   :  { %v948_v46 = vrot.slane %v947_v44, 4  ;;  %v960_v47 = vadd.f32 %v959_v45, %v957_v43 }
 0x3a8   :  { %v949_v48 = vadd.f32 %v948_v46, %v947_v44  ;;  %v961_v49 = vrot.slane %v960_v47, 4 }
 0x3aa   :  { %v950_v50 = vrot.slane %v949_v48, 2  ;;  %v962_v51 = vadd.f32 %v961_v49, %v960_v47 }
 0x3ac   :  { %v951_v52 = vadd.f32 %v950_v50, %v949_v48  ;;  %v963_v53 = vrot.slane %v962_v51, 2 }
 0x3ae   :  { %v952_v54 = vrot.slane %v951_v52, 1  ;;  %v964_v55 = vadd.f32 %v963_v53, %v962_v51 }
 0x3b0   :  { %v965_v56 = vrot.slane %v964_v55, 1  ;;  %v953_v57 = vadd.f32 %v952_v54, %v951_v52 }
 0x3b2   :  { %v966_v58 = vadd.f32 %v965_v56, %v964_v55 }
 0x3b4   :  { %v967_v59 = vsel %vm483_vm1, %v953_v57, %v966_v58 }
 0x3b5   :  { %1528 = vmatmul.mubr.f32.vlgmr.msra.gmra.mrb[4].mxu0 %v967_v59 }
 0x488   :  { %v1050_v60 = vpop.f32.mrb[4].mxu0 }
 0x489   :  { %v1054_v61 = vmul.f32 %v1050_v60, %v1050_v60  ;;  %v1062_v62 = vrot.slane %v1050_v60, %v578_v2  ;;  %v1529_v3 = vpop.f32.mrb[5].mxu0 }
 0x48b   :  { %v1056_v4 = vrot.slane %v1054_v61, 7  ;;  %v1063_v5 = vsub.f32 %v922_v35, %v1062_v62  ;;  %v1064_v13 = vsub.f32 %v1491_v33, %v1062_v62  ;;  %v1065_v14 = vsub.f32 %v932_v40, %v1062_v62 }
 0x48c   :  { %v1066_v15 = vsub.f32 %v1494_v39, %v1062_v62 }
 0x48d   :  { %v1058_v1 = vsub.f32 %v1050_v60, %v1056_v4 }
 0x48f   :  { %v1067_v16 = vadd.f32 1e-05, %v1058_v1 }
 0x491   :  { %1728 = vrsqrt.f32 %v1067_v16 }
 0x49b   :  { %v1729_v17 = vpop.eup %1728 }
 0x49c   :  { %v1072_v18 = vrot.slane %v1729_v17, %v588_v20 }
 0x49e   :  { %v1073_v21 = vmul.f32 %v1072_v18, %v1063_v5  ;;  %v1074_v22 = vmul.f32 %v1072_v18, %v1064_v13  ;;  %v1075_v2 = vmul.f32 %v1072_v18, %v1065_v14  ;;  %v1076_v23 = vmul.f32 %v1072_v18, %v1066_v15 }
 0x4a0   :  { %v1084_v24 = vmul.f32 %v1160_v19, %v1073_v21  ;;  %v1085_v12 = vmul.f32 %v1160_v19, %v1074_v22  ;;  %v1086_v25 = vmul.f32 %v1160_v19, %v1075_v2  ;;  %v1087_v8 = vmul.f32 %v1160_v19, %v1076_v23 }
 0x4a2   :  { %v1095_v11 = vadd.f32 %v1161_v0, %v1084_v24  ;;  %v1096_v26 = vadd.f32 %v1161_v0, %v1085_v12  ;;  %v1097_v63 = vadd.f32 %v1161_v0, %v1086_v25  ;;  %v1098_v20 = vadd.f32 %v1161_v0, %v1087_v8 }
 0x4a4   :  { %v1103_v27 = vadd.f32 %v1095_v11, %v1974_v6  ;;  %v1104_v28 = vadd.f32 %v1096_v26, %v1976_v7  ;;  %v1105_v29 = vadd.f32 %v1097_v63, %v1982_v9  ;;  %v1106_v30 = vadd.f32 %v1098_v20, %v1984_v10 }
 0x4a6   :  { %v1107_v31 = vmax.f32 %v1103_v27, 0.0  ;;  %v1108_v32 = vmax.f32 %v1104_v28, 0.0  ;;  %v1109_v33 = vmax.f32 %v1105_v29, 0.0  ;;  %v1110_v34 = vmax.f32 %v1106_v30, 0.0 }
 0x4a8   :  { %1111 = vst [vmem:[#allocation11] sm:$0xff] %v1107_v31  ;;  %1112 = vst [vmem:[#allocation11 + $0x8] sm:$0xff] %v1108_v32 }
 0x4a9   :  { %1113 = vst [vmem:[#allocation11 + $0x10] sm:$0xff] %v1109_v33  ;;  %1114 = vst [vmem:[#allocation11 + $0x18] sm:$0xff] %v1110_v34 }
 0x4aa   :  { %1829 = shalt.err (!%p1826_p8)
}
 0x4ab   :  { %s1830_s19 = scalar_lea.hbm %s2092_s8, 512 }
 0x4ac   :  { %p1831_p9 = scmp.ne.s32.totalorder %s2092_s8, %s1830_s19  ;;  %p1834_p10 = scmp.lt.u32.totalorder %s1830_s19, %s2092_s8 }
 0x4ae   :  { %p1836_p11 = pnand %p1834_p10, %p1831_p9 }
 0x4b0   :  { %1839 = shalt.err (!%p1836_p11)
}
 0x4b1   :  { %1126 = dma.vmem_to_hbm [thread:$0]  %s1121_s17, 512, %s2092_s8, [#allocation5], %s1852_s1, %s1852_s1, %s1853_s28  }
 0x4b2   :  { %1846 = dma.done.wait [#allocation5], 512  }
 0x4b3   :  { %1847 = vsyncadd [#allocation5], 4294966784 }
 0x4b4   :  { %1130 = vsyncpa [#allocation4], 1 }
 0x4b5   :  { %1131 = vsyncpa [#allocation7], 1 }
 0x4b6   :  { %1132 = vsyncpa [#allocation10], 1 }
 0x4b7   :  { %1133 = vsyncpa [#allocation5], 1 }

</bundles_post_ra>
